<compile_context>
chip_gen: v7x
topology: tpu7x:2x2x1
jax: 0.10.0
libtpu: 0.0.40
codegen_flags: <defaults>
</compile_context>

<pallas_src>
import functools

import numpy as np
import jax
import jax.numpy as jnp
from jax.experimental import pallas as pl
from jax.experimental.pallas import tpu as pltpu


def _temporal_block_kernel(dilation, padding, has_downsample, fuse_taps, *refs):
    """Fused TCN residual block on one (Nb, C, Lt) tile (NCL layout, time = lanes).

    refs (has_downsample=True):
      x_ref (Nb,Cin,Lt), w1 (Cout,K*Cin), b1 (Cout,1), w2 (Cout,K*Cout), b2 (Cout,1),
      wd (Cout,Cin), bd (Cout,1), o_ref (Nb,Cout,Lt),
      xcarry (Nb,Cin,P) bf16 VMEM, h1carry (Nb,Cout,P) bf16 VMEM
    refs (has_downsample=False): same without wd/bd (identity residual, exact f32 add).
    """
    if has_downsample:
        (x_ref, w1_ref, b1_ref, w2_ref, b2_ref, wd_ref, bd_ref,
         o_ref, xcarry_ref, h1carry_ref) = refs
    else:
        (x_ref, w1_ref, b1_ref, w2_ref, b2_ref,
         o_ref, xcarry_ref, h1carry_ref) = refs
        wd_ref = bd_ref = None

    Nb, Cin, Lt = x_ref.shape
    Cout = o_ref.shape[1]
    K = w1_ref.shape[1] // Cin
    P = padding
    d = dilation
    f32 = jnp.float32
    mxu_dt = w1_ref.dtype                       # MXU / tap / carry dtype (bf16)

    if P > 0:
        @pl.when(pl.program_id(1) == 0)         # start of each sequence: zero history
        def _init_carries():
            xcarry_ref[...] = jnp.zeros_like(xcarry_ref)
            h1carry_ref[...] = jnp.zeros_like(h1carry_ref)

    # Small weights / biases: load once, hoisted out of the batch loop.
    w1 = w1_ref[...]
    w2 = w2_ref[...]
    b1 = b1_ref[...]
    b2 = b2_ref[...]
    if has_downsample:
        wd = wd_ref[...]
        bd = bd_ref[...]

    def dilated_conv(wm, xfull, C):
        """Causal dilated conv on one element: wm (Cout, K*C) bf16, xfull (C, P+Lt) bf16.
        Returns (Cout, Lt) f32 (pre-bias)."""
        if fuse_taps:
            # One fused MXU pass over the K folded taps (K*C small).
            xim = jnp.concatenate(
                [xfull[:, k * d:k * d + Lt] for k in range(K)], axis=0)
            return jnp.dot(wm, xim, preferred_element_type=f32)
        # Larger channels: accumulate K matmuls on shifted slices (no K-fold copy).
        acc = jnp.dot(wm[:, :C], xfull[:, 0:Lt], preferred_element_type=f32)
        for k in range(1, K):
            acc = acc + jnp.dot(wm[:, k * C:(k + 1) * C],
                                xfull[:, k * d:k * d + Lt],
                                preferred_element_type=f32)
        return acc

    for b in range(Nb):                         # Nb is small & static -> unrolled
        xb = x_ref[b]                           # (Cin, Lt), native dtype
        xq = xb.astype(mxu_dt)                  # bf16 once, reused by both MXU paths
        if P > 0:
            xfull = jnp.concatenate([xcarry_ref[b], xq], axis=-1)    # (Cin, P+Lt)
            xcarry_ref[b] = xfull[:, Lt:Lt + P]                      # tail, write now
        else:
            xfull = xq

        # conv1 + bias + ReLU (dropout1 == identity in eval mode)
        h1 = jnp.maximum(dilated_conv(w1, xfull, Cin) + b1, 0.0)     # (Cout, Lt) f32
        h1q = h1.astype(mxu_dt)
        if P > 0:
            h1full = jnp.concatenate([h1carry_ref[b], h1q], axis=-1)  # (Cout, P+Lt)
            h1carry_ref[b] = h1full[:, Lt:Lt + P]                     # write now
        else:
            h1full = h1q

        # conv2 + bias + ReLU (dropout2 == identity)
        h2 = jnp.maximum(dilated_conv(w2, h1full, Cout) + b2, 0.0)   # (Cout, Lt) f32

        # residual branch: real 1x1 conv only when downsampling, else exact f32 add
        if has_downsample:
            res = jnp.dot(wd, xq, preferred_element_type=f32) + bd
        else:
            res = xb.astype(f32)

        o_ref[b] = jnp.maximum(h2 + res, 0.0).astype(o_ref.dtype)    # lane-dense store


def _vmem_budget():
    """Generation-aware VMEM limit (e.g. ~96 MiB on 128 MiB v5e/v6e, ~48 MiB on v7x)."""
    cap = 64 * 1024 * 1024
    try:
        info_cap = int(pltpu.get_tpu_info().vmem_capacity_bytes)
        if info_cap > 0:
            cap = info_cap
    except Exception:
        pass
    limit = max(32 * 1024 * 1024, min(cap * 3 // 4, 96 * 1024 * 1024))
    return limit


def _pick_time_tile(L, bytes_for_lt, budget, max_tile=2048):
    """Largest time tile (multiple of 128, or L itself when L is small) within budget."""
    if L <= 256:
        return L                               # single full-extent tile
    lt = min(max_tile, -(-L // 128) * 128)
    while lt > 128 and bytes_for_lt(lt) > budget:
        lt -= 128
    return max(lt, 128)


def _pick_batch_tile(N, bytes_for_nb, budget):
    """Largest batch tile within budget, keeping >=2 batch grid steps when possible
    (so the parallel axis can be sharded across v7x's two TensorCores)."""
    for nb in range(min(N, 8), 0, -1):
        if N % nb:
            continue
        if bytes_for_nb(nb) > budget:
            continue
        if N >= 2 and N // nb < 2:
            continue
        return nb
    return 1


def temporal_block_forward(x_ncl, W1, b1, W2, b2, Wd=None, bd=None, *,
                           dilation, padding, compute_dtype=jnp.bfloat16,
                           out_dtype=None, time_tile=None, batch_tile=None):
    """x_ncl: (N, C_in, L).  W1/W2: (C_out, C_in/C_out, K) effective (post weight-norm)
    weights.  Wd: (C_out, C_in, 1) downsample weight or None (identity residual).
    Returns (N, C_out, L) in NCL layout.  out_dtype=jnp.bfloat16 halves HBM writeback
    (useful on bandwidth-poor v5e) when the consumer tolerates it."""
    N, Cin, L = x_ncl.shape
    Cout, _, K = W1.shape
    assert padding == dilation * (K - 1), "TCN causal setting (chomp == left pad)"
    out_dtype = x_ncl.dtype if out_dtype is None else out_dtype

    has_downsample = Wd is not None
    if not has_downsample:
        assert Cin == Cout, "identity residual requires n_inputs == n_outputs"
    # Fold K dilated taps: column ordering k*C + c matches the kernel's tap slicing.
    w1m = jnp.transpose(W1, (0, 2, 1)).reshape(Cout, K * Cin).astype(compute_dtype)
    w2m = jnp.transpose(W2, (0, 2, 1)).reshape(Cout, K * Cout).astype(compute_dtype)
    b1c = b1.reshape(Cout, 1).astype(jnp.float32)
    b2c = b2.reshape(Cout, 1).astype(jnp.float32)
    if has_downsample:
        wdm = Wd[:, :, 0].astype(compute_dtype)                      # (Cout, Cin)
        bdc = bd.reshape(Cout, 1).astype(jnp.float32)

    # Fuse taps into one matmul only while the folded contraction stays small.
    fuse_taps = K * max(Cin, Cout) <= 128

    # ---- generation-aware tiling ------------------------------------------------
    vmem_limit = _vmem_budget()
    tile_budget = vmem_limit // 2                    # headroom for compiler scratch
    x_bytes = np.dtype(x_ncl.dtype).itemsize
    o_bytes = np.dtype(out_dtype).itemsize
    c_bytes = np.dtype(compute_dtype).itemsize
    Pc = max(padding, 1)                             # avoid zero-sized scratch

    def per_step_bytes(nb, lt):
        io = 2 * nb * lt * (Cin * x_bytes + Cout * o_bytes)          # dbl-buffered tiles
        # per-element in-kernel temporaries (bf16 taps/gathers + f32 h1/h2/out/x)
        inter = lt * ((K + 1) * (Cin + Cout) * c_bytes + 3 * Cout * 4 + Cin * 4)
        wts = 2 * Cout * (K * (Cin + Cout) + Cin + 3) * 4
        carry = nb * Pc * (Cin + Cout) * c_bytes
        return io + inter + wts + carry

    if time_tile is not None:
        Lt = time_tile
        assert Lt == L or Lt % 128 == 0, "time_tile must be a multiple of 128 (or == L)"
    else:
        Lt = _pick_time_tile(L, lambda lt: per_step_bytes(1, lt), tile_budget)
    if batch_tile is not None:
        Nb = batch_tile
        assert N % Nb == 0, "batch_tile must divide N"
    else:
        Nb = _pick_batch_tile(N, lambda nb: per_step_bytes(nb, Lt), tile_budget)

    # Non-divisible L: pad once on the right (causal => cannot affect valid outputs).
    Lp = -(-L // Lt) * Lt
    x_in = x_ncl if Lp == L else jnp.pad(x_ncl, ((0, 0), (0, 0), (0, Lp - L)))

    kernel = functools.partial(_temporal_block_kernel, dilation, padding,
                               has_downsample, fuse_taps)

    in_specs = [
        pl.BlockSpec((Nb, Cin, Lt), lambda n, t: (n, 0, t)),         # x (NCL tile)
        pl.BlockSpec((Cout, K * Cin), lambda n, t: (0, 0)),          # w1 (folded taps)
        pl.BlockSpec((Cout, 1), lambda n, t: (0, 0)),                # b1
        pl.BlockSpec((Cout, K * Cout), lambda n, t: (0, 0)),         # w2 (folded taps)
        pl.BlockSpec((Cout, 1), lambda n, t: (0, 0)),                # b2
    ]
    inputs = [x_in, w1m, b1c, w2m, b2c]
    if has_downsample:
        in_specs += [pl.BlockSpec((Cout, Cin), lambda n, t: (0, 0)),  # wd (1x1)
                     pl.BlockSpec((Cout, 1), lambda n, t: (0, 0))]    # bd
        inputs += [wdm, bdc]

    out = pl.pallas_call(
        kernel,
        out_shape=jax.ShapeDtypeStruct((N, Cout, Lp), out_dtype),
        grid_spec=pltpu.PrefetchScalarGridSpec(
            num_scalar_prefetch=0,
            grid=(N // Nb, Lp // Lt),
            in_specs=in_specs,
            out_specs=pl.BlockSpec((Nb, Cout, Lt), lambda n, t: (n, 0, t)),
            scratch_shapes=[
                pltpu.VMEM((Nb, Cin, Pc), compute_dtype),   # causal carry of x  (bf16)
                pltpu.VMEM((Nb, Cout, Pc), compute_dtype),  # causal carry of h1 (bf16)
            ],
        ),
        compiler_params=pltpu.CompilerParams(
            # Batch axis independent -> megacore sharding; time axis carries the causal
            # state and MUST stay sequential ("arbitrary", innermost).
            dimension_semantics=("parallel", "arbitrary"),
            vmem_limit_bytes=vmem_limit,
        ),
    )(*inputs)
    return out if Lp == L else out[:, :, :L]


def _ref_forward(x, W1, b1, W2, b2, Wd, bd, dilation, padding, quant_dtype=None):
    """Pure-JAX reference (conv + chomp == causal conv), NCL layout.
    quant_dtype=bf16 mirrors the kernel's MXU-input quantization; None = pure f32."""
    f32 = jnp.float32
    hi = jax.lax.Precision.HIGHEST

    def q(a):
        return a.astype(quant_dtype).astype(f32) if quant_dtype is not None else a.astype(f32)

    N, Cin, L = x.shape

    def causal_conv(h, W, b):
        hp = jnp.pad(q(h), ((0, 0), (0, 0), (padding, 0)))
        Kk = W.shape[2]
        out = jnp.zeros((h.shape[0], W.shape[0], L), f32)
        for k in range(Kk):
            out = out + jnp.einsum('ncl,oc->nol',
                                   hp[:, :, k * dilation:k * dilation + L],
                                   q(W[:, :, k]), precision=hi)
        return out + b.astype(f32)[None, :, None]

    h1 = jax.nn.relu(causal_conv(x, W1, b1))
    h2 = jax.nn.relu(causal_conv(h1, W2, b2))
    if Wd is None:
        res = x.astype(f32)
    else:
        res = jnp.einsum('ncl,oc->nol', q(x), q(Wd[:, :, 0]), precision=hi) \
            + bd.astype(f32)[None, :, None]
    return jax.nn.relu(h2 + res)


if __name__ == "__main__":
    key = jax.random.PRNGKey(0)

    def make_params(k, Cin, Cout, K, with_downsample):
        ks = jax.random.split(k, 8)
        v1 = jax.random.normal(ks[0], (Cout, Cin, K), jnp.float32) * 0.01
        g1 = jax.random.uniform(ks[1], (Cout,), jnp.float32, minval=0.5, maxval=1.5)
        b1 = jax.random.normal(ks[2], (Cout,), jnp.float32) * 0.1
        v2 = jax.random.normal(ks[3], (Cout, Cout, K), jnp.float32) * 0.01
        g2 = jax.random.uniform(ks[4], (Cout,), jnp.float32, minval=0.5, maxval=1.5)
        b2 = jax.random.normal(ks[5], (Cout,), jnp.float32) * 0.1

        def weight_norm(v, g):   # weight = g * v / ||v||, norm over all dims but 0
            nrm = jnp.sqrt(jnp.sum(v * v, axis=(1, 2), keepdims=True))
            return g[:, None, None] * v / nrm

        W1, W2 = weight_norm(v1, g1), weight_norm(v2, g2)
        if with_downsample:
            Wd = jax.random.normal(ks[6], (Cout, Cin, 1), jnp.float32) * 0.01
            bd = jax.random.normal(ks[7], (Cout,), jnp.float32) * 0.1
        else:
            Wd, bd = None, None
        return W1, b1, W2, b2, Wd, bd

    # case 1: TemporalBlock(4 -> 8, K=3, dilation=2), N=2, L=16; single tile, downsample.
    # case 2: TemporalBlock(8 -> 8, K=3, dilation=2), N=4, L=256; (batch x time) grid,
    #         causal carries across time tiles, identity residual, >=2 parallel steps.
    # case 3: L=200 not divisible by the 128 time tile -> right-pad + slice-back path.
    # case 4: wider channels (48 -> 64) -> exercises the accumulated per-tap MXU path.
    cases = [
        dict(N=2, Cin=4, Cout=8, K=3, dilation=2, L=16, downsample=True,
             time_tile=None, batch_tile=None),
        dict(N=4, Cin=8, Cout=8, K=3, dilation=2, L=256, downsample=False,
             time_tile=128, batch_tile=2),
        dict(N=2, Cin=4, Cout=4, K=2, dilation=1, L=200, downsample=False,
             time_tile=128, batch_tile=None),
        dict(N=2, Cin=48, Cout=64, K=3, dilation=1, L=128, downsample=True,
             time_tile=None, batch_tile=None),
    ]
    for idx, c in enumerate(cases):
        kp, kx, key = jax.random.split(key, 3)
        W1, b1, W2, b2, Wd, bd = make_params(kp, c["Cin"], c["Cout"], c["K"],
                                             c["downsample"])
        x = jax.random.normal(kx, (c["N"], c["Cin"], c["L"]), jnp.float32)
        padding = c["dilation"] * (c["K"] - 1)

        out = temporal_block_forward(x, W1, b1, W2, b2, Wd, bd,
                                     dilation=c["dilation"], padding=padding,
                                     time_tile=c["time_tile"],
                                     batch_tile=c["batch_tile"])
        out = jax.block_until_ready(out)
        assert out.shape == (c["N"], c["Cout"], c["L"])

        # tight check vs a reference using the same bf16 MXU-input quantization
        ref_q = _ref_forward(x, W1, b1, W2, b2, Wd, bd, c["dilation"], padding,
                             quant_dtype=jnp.bfloat16)
        assert jnp.allclose(out, ref_q, atol=5e-3, rtol=5e-3), \
            f"case {idx}: mismatch vs bf16-matched reference"
        # loose check vs the pure-f32 module semantics (bf16 quantization error only)
        ref_f = _ref_forward(x, W1, b1, W2, b2, Wd, bd, c["dilation"], padding,
                             quant_dtype=None)
        assert jnp.allclose(out, ref_f, atol=5e-2, rtol=5e-2), \
            f"case {idx}: mismatch vs f32 reference"

    # TODO(synk): training-mode dropout (p=0.2) not implemented; this is the
    # eval/inference forward where nn.Dropout is an identity.
    print("KERNEL_OK")
</pallas_src>

<mosaic_0001>
module attributes {stable_mosaic.version = 11 : i64} {
  func.func @_temporal_block_kernel(%arg0: i32, %arg1: i32, %arg2: memref<1x4x16xf32, #tpu.memory_space<vmem>>, %arg3: memref<8x12xbf16, #tpu.memory_space<vmem>>, %arg4: memref<8x1xf32, #tpu.memory_space<vmem>>, %arg5: memref<8x24xbf16, #tpu.memory_space<vmem>>, %arg6: memref<8x1xf32, #tpu.memory_space<vmem>>, %arg7: memref<8x4xbf16, #tpu.memory_space<vmem>>, %arg8: memref<8x1xf32, #tpu.memory_space<vmem>>, %arg9: memref<1x8x16xf32, #tpu.memory_space<vmem>>, %arg10: memref<1x4x4xbf16, #tpu.memory_space<vmem>>, %arg11: memref<1x8x4xbf16, #tpu.memory_space<vmem>>) attributes {dimension_semantics = [#tpu.dimension_semantics<parallel>, #tpu.dimension_semantics<arbitrary>], iteration_bounds = array<i64: 2, 1>, scalar_prefetch = 0 : i64, scratch_operands = 2 : i64, tpu.core_type = #tpu.core_type<tc>, window_params = [{transform_indices = @transform_0, window_bounds = array<i64: 1, 4, 16>}, {pipeline_mode = #tpu.pipeline_mode<synchronous>, transform_indices = @transform_1, window_bounds = array<i64: 8, 12>}, {pipeline_mode = #tpu.pipeline_mode<synchronous>, transform_indices = @transform_2, window_bounds = array<i64: 8, 1>}, {pipeline_mode = #tpu.pipeline_mode<synchronous>, transform_indices = @transform_3, window_bounds = array<i64: 8, 24>}, {pipeline_mode = #tpu.pipeline_mode<synchronous>, transform_indices = @transform_4, window_bounds = array<i64: 8, 1>}, {pipeline_mode = #tpu.pipeline_mode<synchronous>, transform_indices = @transform_5, window_bounds = array<i64: 8, 4>}, {pipeline_mode = #tpu.pipeline_mode<synchronous>, transform_indices = @transform_6, window_bounds = array<i64: 8, 1>}, {transform_indices = @transform_7, window_bounds = array<i64: 1, 8, 16>}]} {
    %c0_i32 = arith.constant 0 : i32
    %0 = arith.cmpi eq, %arg1, %c0_i32 : i32
    %1 = arith.extui %0 : i1 to i32
    %c0_i32_0 = arith.constant 0 : i32
    %2 = arith.cmpi ne, %1, %c0_i32_0 : i32
    scf.if %2 {
      %cst_35 = arith.constant 0.000000e+00 : bf16
      %54 = vector.broadcast %cst_35 : bf16 to vector<1x4x4xbf16>
      %c0_36 = arith.constant 0 : index
      %c0_37 = arith.constant 0 : index
      %c0_38 = arith.constant 0 : index
      %55 = vector.load %arg10[%c0_36, %c0_37, %c0_38] : memref<1x4x4xbf16, #tpu.memory_space<vmem>>, vector<1x4x4xbf16>
      tpu.vector_store %arg10[%c0_36, %c0_37, %c0_38], %54 {strides = array<i32>} : memref<1x4x4xbf16, #tpu.memory_space<vmem>>, vector<1x4x4xbf16>,
      %cst_39 = arith.constant 0.000000e+00 : bf16
      %56 = vector.broadcast %cst_39 : bf16 to vector<1x8x4xbf16>
      %c0_40 = arith.constant 0 : index
      %c0_41 = arith.constant 0 : index
      %c0_42 = arith.constant 0 : index
      %57 = vector.load %arg11[%c0_40, %c0_41, %c0_42] : memref<1x8x4xbf16, #tpu.memory_space<vmem>>, vector<1x8x4xbf16>
      tpu.vector_store %arg11[%c0_40, %c0_41, %c0_42], %56 {strides = array<i32>} : memref<1x8x4xbf16, #tpu.memory_space<vmem>>, vector<1x8x4xbf16>,
    } else {
    }
    %c0 = arith.constant 0 : index
    %c0_1 = arith.constant 0 : index
    %3 = vector.load %arg3[%c0, %c0_1] : memref<8x12xbf16, #tpu.memory_space<vmem>>, vector<8x12xbf16>
    %c0_2 = arith.constant 0 : index
    %c0_3 = arith.constant 0 : index
    %4 = vector.load %arg5[%c0_2, %c0_3] : memref<8x24xbf16, #tpu.memory_space<vmem>>, vector<8x24xbf16>
    %c0_4 = arith.constant 0 : index
    %c0_5 = arith.constant 0 : index
    %5 = vector.load %arg4[%c0_4, %c0_5] : memref<8x1xf32, #tpu.memory_space<vmem>>, vector<8x1xf32>
    %c0_6 = arith.constant 0 : index
    %c0_7 = arith.constant 0 : index
    %6 = vector.load %arg6[%c0_6, %c0_7] : memref<8x1xf32, #tpu.memory_space<vmem>>, vector<8x1xf32>
    %c0_8 = arith.constant 0 : index
    %c0_9 = arith.constant 0 : index
    %7 = vector.load %arg7[%c0_8, %c0_9] : memref<8x4xbf16, #tpu.memory_space<vmem>>, vector<8x4xbf16>
    %c0_10 = arith.constant 0 : index
    %c0_11 = arith.constant 0 : index
    %8 = vector.load %arg8[%c0_10, %c0_11] : memref<8x1xf32, #tpu.memory_space<vmem>>, vector<8x1xf32>
    %c0_12 = arith.constant 0 : index
    %c0_13 = arith.constant 0 : index
    %c0_14 = arith.constant 0 : index
    %9 = vector.load %arg2[%c0_12, %c0_13, %c0_14] : memref<1x4x16xf32, #tpu.memory_space<vmem>>, vector<1x4x16xf32>
    %10 = vector.shape_cast %9 : vector<1x4x16xf32> to vector<4x16xf32>
    %11 = arith.truncf %10 : vector<4x16xf32> to vector<4x16xbf16>
    %c0_15 = arith.constant 0 : index
    %c0_16 = arith.constant 0 : index
    %c0_17 = arith.constant 0 : index
    %12 = vector.load %arg10[%c0_15, %c0_16, %c0_17] : memref<1x4x4xbf16, #tpu.memory_space<vmem>>, vector<1x4x4xbf16>
    %13 = vector.shape_cast %12 : vector<1x4x4xbf16> to vector<4x4xbf16>
    %14 = tpu.concatenate %13, %11 in 1 : vector<4x4xbf16>, vector<4x16xbf16> -> vector<4x20xbf16>
    %15 = vector.extract_strided_slice %14 {offsets = [0, 16], sizes = [4, 4], strides = [1, 1]} : vector<4x20xbf16> to vector<4x4xbf16>
    %c0_18 = arith.constant 0 : index
    %c0_19 = arith.constant 0 : index
    %c0_20 = arith.constant 0 : index
    %16 = vector.load %arg10[%c0_18, %c0_19, %c0_20] : memref<1x4x4xbf16, #tpu.memory_space<vmem>>, vector<1x4x4xbf16>
    %17 = vector.shape_cast %16 : vector<1x4x4xbf16> to vector<4x4xbf16>
    %18 = vector.shape_cast %15 : vector<4x4xbf16> to vector<1x4x4xbf16>
    tpu.vector_store %arg10[%c0_18, %c0_19, %c0_20], %18 {strides = array<i32>} : memref<1x4x4xbf16, #tpu.memory_space<vmem>>, vector<1x4x4xbf16>,
    %19 = vector.extract_strided_slice %14 {offsets = [0, 0], sizes = [4, 16], strides = [1, 1]} : vector<4x20xbf16> to vector<4x16xbf16>
    %20 = vector.extract_strided_slice %14 {offsets = [0, 2], sizes = [4, 16], strides = [1, 1]} : vector<4x20xbf16> to vector<4x16xbf16>
    %21 = vector.extract_strided_slice %14 {offsets = [0, 4], sizes = [4, 16], strides = [1, 1]} : vector<4x20xbf16> to vector<4x16xbf16>
    %22 = tpu.concatenate %19, %20, %21 in 0 : vector<4x16xbf16>, vector<4x16xbf16>, vector<4x16xbf16> -> vector<12x16xbf16>
    %cst = arith.constant dense<0.000000e+00> : vector<8x16xf32>
    %23 = tpu.matmul %3, %22, %cst {dimension_numbers = #tpu.dot_dimension_numbers<[1], [0], [0], [1], [0, 0, 1, 1], [], []>} : vector<8x12xbf16>, vector<12x16xbf16>, vector<8x16xf32> -> vector<8x16xf32>
    %24 = vector.broadcast %5 : vector<8x1xf32> to vector<8x16xf32>
    %25 = arith.addf %23, %24 : vector<8x16xf32>
    %cst_21 = arith.constant 0.000000e+00 : f32
    %26 = vector.broadcast %cst_21 : f32 to vector<8x16xf32>
    %27 = arith.maximumf %25, %26 : vector<8x16xf32>
    %28 = arith.truncf %27 : vector<8x16xf32> to vector<8x16xbf16>
    %c0_22 = arith.constant 0 : index
    %c0_23 = arith.constant 0 : index
    %c0_24 = arith.constant 0 : index
    %29 = vector.load %arg11[%c0_22, %c0_23, %c0_24] : memref<1x8x4xbf16, #tpu.memory_space<vmem>>, vector<1x8x4xbf16>
    %30 = vector.shape_cast %29 : vector<1x8x4xbf16> to vector<8x4xbf16>
    %31 = tpu.concatenate %30, %28 in 1 : vector<8x4xbf16>, vector<8x16xbf16> -> vector<8x20xbf16>
    %32 = vector.extract_strided_slice %31 {offsets = [0, 16], sizes = [8, 4], strides = [1, 1]} : vector<8x20xbf16> to vector<8x4xbf16>
    %c0_25 = arith.constant 0 : index
    %c0_26 = arith.constant 0 : index
    %c0_27 = arith.constant 0 : index
    %33 = vector.load %arg11[%c0_25, %c0_26, %c0_27] : memref<1x8x4xbf16, #tpu.memory_space<vmem>>, vector<1x8x4xbf16>
    %34 = vector.shape_cast %33 : vector<1x8x4xbf16> to vector<8x4xbf16>
    %35 = vector.shape_cast %32 : vector<8x4xbf16> to vector<1x8x4xbf16>
    tpu.vector_store %arg11[%c0_25, %c0_26, %c0_27], %35 {strides = array<i32>} : memref<1x8x4xbf16, #tpu.memory_space<vmem>>, vector<1x8x4xbf16>,
    %36 = vector.extract_strided_slice %31 {offsets = [0, 0], sizes = [8, 16], strides = [1, 1]} : vector<8x20xbf16> to vector<8x16xbf16>
    %37 = vector.extract_strided_slice %31 {offsets = [0, 2], sizes = [8, 16], strides = [1, 1]} : vector<8x20xbf16> to vector<8x16xbf16>
    %38 = vector.extract_strided_slice %31 {offsets = [0, 4], sizes = [8, 16], strides = [1, 1]} : vector<8x20xbf16> to vector<8x16xbf16>
    %39 = tpu.concatenate %36, %37, %38 in 0 : vector<8x16xbf16>, vector<8x16xbf16>, vector<8x16xbf16> -> vector<24x16xbf16>
    %cst_28 = arith.constant dense<0.000000e+00> : vector<8x16xf32>
    %40 = tpu.matmul %4, %39, %cst_28 {dimension_numbers = #tpu.dot_dimension_numbers<[1], [0], [0], [1], [0, 0, 1, 1], [], []>} : vector<8x24xbf16>, vector<24x16xbf16>, vector<8x16xf32> -> vector<8x16xf32>
    %41 = vector.broadcast %6 : vector<8x1xf32> to vector<8x16xf32>
    %42 = arith.addf %40, %41 : vector<8x16xf32>
    %cst_29 = arith.constant 0.000000e+00 : f32
    %43 = vector.broadcast %cst_29 : f32 to vector<8x16xf32>
    %44 = arith.maximumf %42, %43 : vector<8x16xf32>
    %cst_30 = arith.constant dense<0.000000e+00> : vector<8x16xf32>
    %45 = tpu.matmul %7, %11, %cst_30 {dimension_numbers = #tpu.dot_dimension_numbers<[1], [0], [0], [1], [0, 0, 1, 1], [], []>} : vector<8x4xbf16>, vector<4x16xbf16>, vector<8x16xf32> -> vector<8x16xf32>
    %46 = vector.broadcast %8 : vector<8x1xf32> to vector<8x16xf32>
    %47 = arith.addf %45, %46 : vector<8x16xf32>
    %48 = arith.addf %44, %47 : vector<8x16xf32>
    %cst_31 = arith.constant 0.000000e+00 : f32
    %49 = vector.broadcast %cst_31 : f32 to vector<8x16xf32>
    %50 = arith.maximumf %48, %49 : vector<8x16xf32>
    %c0_32 = arith.constant 0 : index
    %c0_33 = arith.constant 0 : index
    %c0_34 = arith.constant 0 : index
    %51 = vector.load %arg9[%c0_32, %c0_33, %c0_34] : memref<1x8x16xf32, #tpu.memory_space<vmem>>, vector<1x8x16xf32>
    %52 = vector.shape_cast %51 : vector<1x8x16xf32> to vector<8x16xf32>
    %53 = vector.shape_cast %50 : vector<8x16xf32> to vector<1x8x16xf32>
    tpu.vector_store %arg9[%c0_32, %c0_33, %c0_34], %53 {strides = array<i32>} : memref<1x8x16xf32, #tpu.memory_space<vmem>>, vector<1x8x16xf32>,
    return
  }
  func.func @transform_0(%arg0: i32, %arg1: i32) -> (i32, i32, i32) {
    %c0_i32 = arith.constant 0 : i32
    %c0_i32_0 = arith.constant 0 : i32
    return %arg0, %c0_i32, %arg1 : i32, i32, i32
  }
  func.func @transform_1(%arg0: i32, %arg1: i32) -> (i32, i32) {
    %c0_i32 = arith.constant 0 : i32
    %c0_i32_0 = arith.constant 0 : i32
    %c0_i32_1 = arith.constant 0 : i32
    return %c0_i32, %c0_i32_0 : i32, i32
  }
  func.func @transform_2(%arg0: i32, %arg1: i32) -> (i32, i32) {
    %c0_i32 = arith.constant 0 : i32
    %c0_i32_0 = arith.constant 0 : i32
    %c0_i32_1 = arith.constant 0 : i32
    return %c0_i32, %c0_i32_0 : i32, i32
  }
  func.func @transform_3(%arg0: i32, %arg1: i32) -> (i32, i32) {
    %c0_i32 = arith.constant 0 : i32
    %c0_i32_0 = arith.constant 0 : i32
    %c0_i32_1 = arith.constant 0 : i32
    return %c0_i32, %c0_i32_0 : i32, i32
  }
  func.func @transform_4(%arg0: i32, %arg1: i32) -> (i32, i32) {
    %c0_i32 = arith.constant 0 : i32
    %c0_i32_0 = arith.constant 0 : i32
    %c0_i32_1 = arith.constant 0 : i32
    return %c0_i32, %c0_i32_0 : i32, i32
  }
  func.func @transform_5(%arg0: i32, %arg1: i32) -> (i32, i32) {
    %c0_i32 = arith.constant 0 : i32
    %c0_i32_0 = arith.constant 0 : i32
    %c0_i32_1 = arith.constant 0 : i32
    return %c0_i32, %c0_i32_0 : i32, i32
  }
  func.func @transform_6(%arg0: i32, %arg1: i32) -> (i32, i32) {
    %c0_i32 = arith.constant 0 : i32
    %c0_i32_0 = arith.constant 0 : i32
    %c0_i32_1 = arith.constant 0 : i32
    return %c0_i32, %c0_i32_0 : i32, i32
  }
  func.func @transform_7(%arg0: i32, %arg1: i32) -> (i32, i32, i32) {
    %c0_i32 = arith.constant 0 : i32
    %c0_i32_0 = arith.constant 0 : i32
    return %arg0, %c0_i32, %arg1 : i32, i32, i32
  }
}

</mosaic_0001>

<bundles_post_ra>
// kernel: tpu_custom_call.1
= control target key start
LH: loop header
LB: loop body
LE: loop exit
PB: predicated region body
PF: predicated region fallthrough
CT: control target
= control target key end

     0   :  { %12 = vsyncpa [#allocation5], 0  ;;  %s1014_s0 = inlined_call_operand.vmem [shape: f32[2,4,16], index: 0, kind: input, shape index: {}]   ;;  %s1015_s1 = inlined_call_operand.vmem [shape: bf16[8,12], index: 1, kind: input, shape index: {}]   ;;  %s1016_s2 = inlined_call_operand.vmem [shape: f32[8,1], index: 2, kind: input, shape index: {}]   ;;  %s1017_s3 = inlined_call_operand.vmem [shape: bf16[8,24], index: 3, kind: input, shape index: {}]   ;;  %s1018_s4 = inlined_call_operand.vmem [shape: f32[8,1], index: 4, kind: input, shape index: {}]   ;;  %s1019_s5 = inlined_call_operand.vmem [shape: bf16[8,4], index: 5, kind: input, shape index: {}]   ;;  %s1020_s6 = inlined_call_operand.vmem [shape: f32[8,1], index: 6, kind: input, shape index: {}]   ;;  %s1021_s7 = inlined_call_operand.hbm [shape: f32[2,8,16], index: 7, kind: output, shape index: {}]  }
   0x1   :  { %14 = vsyncpa [#allocation5 + $0x1], 0  ;;  %s856_s24 = smov 0   ;;  %s858_s25 = smov 0  }
   0x2   :  { %s860_s26 = smov 0   ;;  %s862_s27 = smov 0  }
   0x3   :  { %s864_s28 = smov 0   ;;  %s866_s29 = smov 0  }
   0x4 LB: > { %s620_s30 = sadd.s32 4294967295, %s805_s29   ;;  %s621_s8 = sadd.s32 4294967294, %s805_s29   ;;  %s805_s29 = sphi %s866_s29, %s20_s29   ;;  %s801_s28 = sphi %s864_s28, %s1028_s28   ;;  %s797_s27 = sphi %s862_s27, %s1027_s27   ;;  %s793_s26 = sphi %s860_s26, %s1026_s26   ;;  %s789_s25 = sphi %s858_s25, %s1025_s25   ;;  %s785_s24 = sphi %s856_s24, %s1024_s24  }
   0x5   : > { %s32_s9 = sadd.s32 1, %s801_s28  ;;  %s195_s10 = sadd.s32 1, %s793_s26 }
   0x6   : > { %p34_p0 = scmp.ge.s32.totalorder %s32_s9, 2  ;;  %p205_p1 = scmp.ne.s32.totalorder %s793_s26, %s789_s25 }
   0x7   : > { %p206_p2 = scmp.eq.s32.totalorder %s620_s30, 1  ;;  %p211_p3 = scmp.ne.s32.totalorder %s789_s25, %s785_s24 }
   0x8   : > { %s1030_s9 = smov (%p34_p0, %s32_s9), 0  ;;  %p212_p5 = scmp.eq.s32.totalorder %s621_s8, 1 }
   0x9   : > { %p896_p4 = por %p206_p2, %p205_p1  ;;  %s190_s12 = ssub.s32 %s801_s28, %s1030_s9 }
   0xa   : > { %p624_p6 = scmp.ge.s32.totalorder %s805_s29, 1  ;;  %p193_p7 = scmp.eq.s32.totalorder %s190_s12, 0 }
   0xb   : > { %p903_p8 = por %p212_p5, %p211_p3  ;;  %p258_p9 = scmp.lt.s32.totalorder %s805_s29, 3 }
   0xc   : > { %s909_s14 = scalar_select %p193_p7, %s793_s26, %s195_s10  }
   0xd   : > { %p259_p10 = pnand %p624_p6, %p258_p9 }
   0xe   : > { %p292_p11 = scmp.lt.s32.totalorder (!%p259_p10), %s797_s27, 1  ;;  %vm304_vm0 = vcmask (!%p259_p10), 25600   ;;  %v807_v0 = vmov (!%p259_p10), 0   ;;  %s808_s20 = smov (!%p259_p10), 4   ;;  %v809_v3 = vmov (!%p259_p10), 0.0   ;;  %vm810_vm1 = vmmov (!%p259_p10), 0  }
   0xf   : > { %262 = sbr.rel (%p259_p10) target bundleno = 961 (0x3c1), region = 48  ;;  %305 = vst.msk [vmem:[#allocation2] sm:$0x3] (!%p259_p10), %vm304_vm0, %v807_v0  ;;  %725 = vset.pattern.permute.xlu1 (!%p259_p10), %v807_v0  ;;  %726 = vset.pattern.permute.xlu0 (!%p259_p10), %v807_v0  ;;  %vm320_vm2 = vcmask (!%p259_p10), 31744   ;;  %s811_s21 = smov (!%p259_p10), 124   ;;  %v310_v9 = vld [vmem:[%s1016_s2] sm:$0xff] (!%p259_p10)  ;;  %v328_v29 = vlaneseq (!%p259_p10) }
  0x10   : > { %642 = vmatprep.subr.bf16.mxu0 (!%p259_p10), %v809_v3  ;;  %648 = vmatprep.subr.bf16.mxu1 (!%p259_p10), %v809_v3  ;;  %s812_s22 = smov (!%p259_p10), 126   ;;  %vm343_vm3 = vcmask (!%p259_p10), 1041408   ;;  %vm346_vm4 = vcmask (!%p259_p10), 1043456   ;;  %vm358_vm5 = vcmask (!%p259_p10), 1045504   ;;  %v308_v15 = vld [vmem:[%s1015_s1] sm:$0xf] (!%p259_p10) }
  0x11   : > { %644 = vmatprep.mubr.msk.bf16.mxu0 (!%p259_p10), %vm810_vm1, %v809_v3  ;;  %652 = vmatprep.mubr.msk.bf16.mxu1 (!%p259_p10), %vm810_vm1, %v809_v3  ;;  %vm354_vm6 = vcmask (!%p259_p10), 97280   ;;  %vm306_vm7 = vcmask (!%p259_p10), 27648   ;;  %v312_v25 = vld [vmem:[%s1019_s5] sm:$0xf] (!%p259_p10)  ;;  %v813_v27 = vmov (!%p259_p10), 1983009808  }
  0x12   : > { %307 = vst.msk [vmem:[#allocation3] sm:$0xf] (!%p259_p10), %vm306_vm7, %v807_v0  ;;  %v326_v28 = vunpack.c.l.s4 (!%p259_p10), %v813_v27  ;;  %v329_v34 = vshrl.u32 (!%p259_p10), %v328_v29, 7  ;;  %v311_v35 = vld [vmem:[%s1018_s4] sm:$0xff] (!%p259_p10)  ;;  %s814_s18 = smov (!%p259_p10), 112   ;;  %vm431_vm8 = vcmask (!%p259_p10), 195584  }
  0x13   : > { %v313_v39 = vld [vmem:[%s1020_s6] sm:$0xff] (!%p259_p10)  ;;  %s289_s23 = sand.u32 (!%p259_p10), 1, %s789_s25   ;;  %s632_s8 = sshll.u32 (!%p259_p10), %s797_s27, 7  ;;  %vm532_vm9 = vcmask (!%p259_p10), 130048  }
  0x14   : > { %v327_v33 = vunpack.c.0.s8 (!%p259_p10), %v326_v28  ;;  %v309_v44 = vld [vmem:[%s1017_s3] sm:$0xf] (!%p259_p10)  ;;  %s625_s30 = sshll.u32 (!%p259_p10), %s289_s23, 3  ;;  %s967_s17 = scalar_lea.hbm (!%p259_p10), %s1021_s7, %s632_s8 }
  0x15   : > { %s291_s10 = scalar_lea.vmem (!%p259_p10), [#allocation4], %s625_s30 }
  0x16   : > { %s293_s15 = scalar_select %p292_p11, %s797_s27, 1  ;;  %v316_v4 = vld [vmem:[#allocation2] sm:$0x3]  ;;  %v330_v36 = vsub.s32 %v327_v33, %v329_v34 }
  0x17   : > { %s549_s12 = sshll.u32 %s291_s10, 4  ;;  %s815_s27 = smov [#allocation4]   ;;  %s969_s12 = int_to_ptr.vmem [resolvable:$true] %s549_s12 }
  0x18   : > { %s626_s16 = sshll.u32 %s293_s15, 2 }
  0x19   : > { %s298_s19 = scalar_lea.vmem %s1014_s0, %s626_s16  ;;  %v403_v26 = vld [vmem:[#allocation3] sm:$0xf] }
  0x1a   : > { %v314_v1 = vld [vmem:[%s298_s19] sm:$0xf]  ;;  %s727_s19 = scalar_lea.vmem %s969_s12, 128 }
  0x1b   : > { %v315_v2 = vpack.c.bf16 %v314_v1, %v314_v1  ;;  %p728_p12 = scmp.ne.s32.totalorder %s969_s12, %s727_s19 }
  0x1d   : > { %318 = vrot.lane.b32.xlu0 %v315_v2, %s808_s20  ;;  %v488_v24 = vsel %vm343_vm3, %v315_v2, 0  ;;  %p729_p13 = pnand %p728_p12, %p896_p4 }
  0x1f   : > { %p730_p0 = pneg %p729_p13 }
  0x8f   : > { %v319_v5 = vpop.permute.xlu0 %318 }
  0x90   : > { %v323_v6 = vsel %vm320_vm2, %v316_v4, %v319_v5 }
  0x91   : > { %v340_v7 = vrot.slane %v323_v6, 4  ;;  %v337_v8 = vrot.slane %v323_v6, 6  ;;  %v331_v37 = vrot.slane %v323_v6, %v330_v36 }
  0x93   : > { %341 = vrot.lane.b32.xlu1 %v340_v7, %s811_s21  ;;  %338 = vrot.lane.b32.xlu0 %v337_v8, %s812_s22 }
  0x97   : > { %351 = vperm.xlu1 %725, %v310_v9  }
 0x105   : > { %v342_v10 = vpop.permute.xlu1 %341  ;;  %v339_v11 = vpop.permute.xlu0 %338 }
 0x106   : > { %v345_v12 = vsel %vm343_vm3, %v323_v6, %v339_v11 }
 0x107   : > { %v348_v13 = vsel %vm346_vm4, %v345_v12, %v342_v10 }
 0x108   : > { %v359_v14 = vsel %vm358_vm5, %v348_v13, 0 }
 0x109   : > { %643 = vmatpush3.bf16.msra.mxu0 %v359_v14 }
 0x10a   : > { %656 = vmatprep.subr.bf16.mxu0 %v809_v3 }
 0x10c   : > { %645 = vmatmul.mubr.msk.bf16.vlgmr.msra.gmra.mrb[0].mxu0 %vm354_vm6, %v308_v15 }
 0x10d   : > { %658 = vmatprep.mubr.msk.bf16.mxu0 %vm810_vm1, %v809_v3  ;;  %657 = vmatpush3.bf16.msra.mxu0 %v488_v24 }
 0x114   : > { %659 = vmatmul.mubr.msk.bf16.vlgmr.msra.gmra.mrb[4].mxu0 %vm320_vm2, %v312_v25 }
 0x116   : > { %v352_v16 = vpop.permute.xlu1 %351 }
 0x1df   : > { %v395_v17 = vpop.f32.mrb[0].mxu0 }
 0x1e0   : > { %v396_v18 = vadd.f32 %v395_v17, %v352_v16  ;;  %v646_v19 = vpop.f32.mrb[1].mxu0 }
 0x1e1   : > { %v398_v20 = vpop.f32.mrb[2].mxu0 }
 0x1e2   : > { %v401_v21 = vmax.f32 %v396_v18, 0.0  ;;  %v647_v22 = vpop.f32.mrb[3].mxu0 }
 0x1e4   : > { %v402_v23 = vpack.c.bf16 %v401_v21, %v401_v21 }
 0x1e6   : > { %405 = vrot.lane.b32.xlu0 %v402_v23, %s808_s20  ;;  %s731_s20 = sshll.u32 %s815_s27, 4  ;;  %s732_s20 = int_to_ptr.vmem [resolvable:$false] %s731_s20 }
 0x1e7   : > { %v524_v48 = vpop.f32.mrb[4].mxu0  ;;  %p734_p1 = scmp.lt.s32.totalorder %s969_s12, %s732_s20 }
 0x1e8   : > { %v660_v49 = vpop.f32.mrb[5].mxu0 }
 0x1e9   : > { %v527_v50 = vpop.f32.mrb[6].mxu0 }
 0x1ea   : > { %v661_v51 = vpop.f32.mrb[7].mxu0 }
 0x258   : > { %v406_v30 = vpop.permute.xlu0 %405 }
 0x259   : > { %v409_v31 = vsel %vm320_vm2, %v403_v26, %v406_v30 }
 0x25a   : > { %421 = vrot.lane.b32.xlu0 %v409_v31, %s811_s21  ;;  %v418_v32 = vrot.slane %v409_v31, 4  ;;  %v628_v38 = vcombine.low %v409_v31, %v409_v31  ;;  %s733_s21 = scalar_lea.vmem %s732_s20, 256 }
 0x25b   : > { %p735_p2 = scmp.lt.s32.totalorder %s733_s21, %s727_s19 }
 0x25c   : > { %419 = vrot.lane.b32.xlu1 %v418_v32, %s812_s22 }
 0x25d   : > { %p736_p3 = por %p735_p2, %p734_p1 }
 0x25e   : > { %481 = vperm.xlu0 %726, %v313_v39  }
 0x25f   : > { %p737_p5 = pnand %p736_p3, %p730_p0 }
 0x260   : > { %428 = vperm.xlu1 %725, %v311_v35  }
 0x264   : > { %332 = vrot.lane.b32.xlu1 %v331_v37, %s814_s18 }
 0x268   : > { %413 = vrot.lane.b32.xlu1 %v628_v38, %s814_s18  ;;  %s535_s18 = scalar_lea.sflag [#allocation5], %s289_s23 }
 0x2cc   : > { %v422_v42 = vpop.permute.xlu0 %421 }
 0x2cd   : > { %v436_v43 = vsel %vm346_vm4, %v422_v42, 0 }
 0x2ce   : > { %v420_v40 = vpop.permute.xlu1 %419 }
 0x2cf   : > { %v424_v41 = vsel %vm346_vm4, %v409_v31, %v420_v40 }
 0x2d0   : > { %649 = vmatpush3.bf16.msra.mxu1 %v424_v41 }
 0x2d1   : > { %650 = vmatprep.subr.bf16.mxu1 %v809_v3 }
 0x2d4   : > { %651 = vmatpush3.bf16.msra.mxu1 %v436_v43 }
 0x2d7   : > { %653 = vmatmul.mubr.msk.bf16.vlgmr.msra.gmra.mrb[0].mxu1 %vm431_vm8, %v309_v44 }
 0x2dd   : > { %v482_v52 = vpop.permute.xlu0 %481 }
 0x2de   : > { %v525_v56 = vadd.f32 %v524_v48, %v482_v52 }
 0x2df   : > { %v429_v45 = vpop.permute.xlu1 %428 }
 0x2e3   : > { %v333_v46 = vpop.permute.xlu1 %332 }
 0x2e4   : > { %336 = vst.msk [vmem:[#allocation2] sm:$0x3] %vm304_vm0, %v333_v46 }
 0x2e7   : > { %v414_v47 = vpop.permute.xlu1 %413 }
 0x2e8   : > { %417 = vst.msk [vmem:[#allocation3] sm:$0xf] %vm306_vm7, %v414_v47 }
 0x3aa   : > { %v472_v53 = vpop.f32.mrb[0].mxu1 }
 0x3ab   : > { %v473_v54 = vadd.f32 %v472_v53, %v429_v45  ;;  %v654_v55 = vpop.f32.mrb[1].mxu1 }
 0x3ac   : > { %v475_v57 = vpop.f32.mrb[2].mxu1 }
 0x3ad   : > { %v478_v58 = vmax.f32 %v473_v54, 0.0  ;;  %v655_v59 = vpop.f32.mrb[3].mxu1 }
 0x3af   : > { %v530_v60 = vadd.f32 %v525_v56, %v478_v58 }
 0x3b1   : > { %v531_v61 = vmax.f32 %v530_v60, 0.0 }
 0x3b3   : > { %533 = vst.msk [vmem:[%s291_s10] sm:$0xff] %vm532_vm9, %v531_v61 }
 0x3b4   : > { %740 = shalt.err (!%p737_p5)
}
 0x3b5   : > { %s741_s22 = scalar_lea.hbm %s967_s17, 128  ;;  %s745_s8 = scalar_lea.hbm %s1021_s7, 256 }
 0x3b6   : > { %p742_p6 = scmp.ne.s32.totalorder %s967_s17, %s741_s22  ;;  %p746_p10 = scmp.lt.u32.totalorder %s967_s17, %s1021_s7 }
 0x3b7   : > { %p747_p11 = scmp.lt.u32.totalorder %s745_s8, %s741_s22  ;;  %p749_p13 = scmp.lt.u32.totalorder %s741_s22, %s967_s17 }
 0x3b8   : > { %p743_p7 = pnand %p742_p6, %p896_p4 }
 0x3b9   : > { %p748_p12 = por %p747_p11, %p746_p10 }
 0x3ba   : > { %p744_p9 = pneg %p743_p7 }
 0x3bb   : > { %p750_p0 = por %p749_p13, %p748_p12 }
 0x3bd   : > { %p751_p1 = pnand %p750_p0, %p744_p9 }
 0x3bf   : > { %754 = shalt.err (!%p751_p1)
}
 0x3c0   : > { %662 = dma.vmem_to_hbm [thread:$0]  (%p896_p4), %s969_s12, 128, %s967_s17, %s535_s18  }
 0x3c1 PF: > { %p668_p2 = scmp.ge.s32.totalorder %s805_s29, 2  ;;  %s561_s16 = sand.u32 1, %s785_s24  }
 0x3c2   : > { %s562_s19 = scalar_lea.sflag [#allocation5], %s561_s16 }
 0x3c3   : > { %p665_p3 = pnand %p668_p2, %p903_p8 }
 0x3c5   : > { %780 = dma.done.wait (!%p665_p3), %s562_s19, 128  }
 0x3c6   : > { %782 = vsyncadd (!%p665_p3), %s562_s19, 4294967168  ;;  %s20_s29 = sadd.s32 1, %s805_s29   ;;  %s1024_s24 = smov %s789_s25 }
 0x3c7   : > { %p17_p5 = scmp.ge.s32.totalorder %s20_s29, 4   ;;  %s1025_s25 = smov %s793_s26 }
 0x3c8   : > { %s1026_s26 = smov %s909_s14  ;;  %s1027_s27 = smov %s801_s28 }
 0x3c9   : > { %s1028_s28 = smov %s1030_s9  ;;  %19 = sbr.rel (!%p17_p5) target bundleno = 4 (0x4), region = 87 }
 0x3d0   :  { %567 = vsyncpa [#allocation5], 1 }
 0x3d1   :  { %569 = vsyncpa [#allocation5 + $0x1], 1 }

</bundles_post_ra>
